<compile_context>
chip_gen: v7x
topology: tpu7x:2x2x1
jax: 0.10.0
libtpu: 0.0.40
codegen_flags: <defaults>
</compile_context>

<pallas_src>
import jax
import jax.numpy as jnp
from jax import lax
from jax.experimental import pallas as pl
from jax.experimental.pallas import tpu as pltpu


# --------------------------------------------------------------------------- #
# kernels
# --------------------------------------------------------------------------- #
def _conv_rows(xp2_ref, b_ref):
    """Shared conv body: three accumulated row-tap matmuls on the MXU.

    xp2_ref : (TB, H+2, RC)  padded input rows (compute dtype)
    b_ref   : (3, RC, NL)    banded conv weight, lanes ordered (i, w, j, c)
    returns : (TB*H, NL)     f32 conv activation
    """
    tb, hp2, rc = xp2_ref.shape
    h = hp2 - 2
    nl = b_ref.shape[-1]
    acc = jnp.zeros((tb * h, nl), jnp.float32)
    for dy in range(3):                            # 3 row taps -> 3 MXU pushes
        # Static slice (sublane offset dy) + leading-dim merge; H % 8 == 0 so
        # the (TB, H, RC) -> (TB*H, RC) reshape is a pure tile relabel.
        lhs = xp2_ref[:, dy:dy + h, :].reshape(tb * h, rc)
        acc = acc + jnp.dot(lhs, b_ref[dy], preferred_element_type=jnp.float32)
    return acc


def _conv_stats_kernel(xp2_ref, b_ref, sum_ref, sq_ref):
    """Pass 1: per-grid-step partial sum / sum-of-squares of the conv output
    (per output lane; reduced to per-channel in the wrapper, f32 throughout)."""
    acc = _conv_rows(xp2_ref, b_ref)                     # (TB*H, NL) f32
    sum_ref[0] = jnp.sum(acc, axis=0, keepdims=True)     # (1, NL)
    sq_ref[0] = jnp.sum(acc * acc, axis=0, keepdims=True)


def _conv_bn_relu_ps_kernel(xp2_ref, b_ref, scale_ref, bias_ref, out_ref):
    """Pass 2: conv -> folded BatchNorm affine -> ReLU -> PixelShuffle,
    stored lane-dense as (TB*H, NL) with lanes ordered (i, w, j, c)."""
    acc = _conv_rows(xp2_ref, b_ref)                     # (TB*H, NL) f32
    z = jnp.maximum(acc * scale_ref[...] + bias_ref[...], 0.0)
    out_ref[...] = z.astype(out_ref.dtype)


# --------------------------------------------------------------------------- #
# wrapper
# --------------------------------------------------------------------------- #
def _pick_images_per_step(n, h, target_m=256, max_m=1024):
    """Largest divisor TB of n with TB*h <= max_m, stopping once TB*h reaches
    target_m (v6e/v7x MXU sweet spot).  Always >= 1."""
    best = 1
    for tb in range(1, n + 1):
        if n % tb:
            continue
        if tb * h > max_m:
            break
        best = tb
        if best * h >= target_m:
            break
    return best


def upsample_forward(x_nchw, w_oihw, gamma, beta, eps=1e-5,
                     compute_dtype=jnp.bfloat16):
    N, Cin, H, W = x_nchw.shape
    Cout = w_oihw.shape[0]            # = 4 * out_nc
    C = Cout // 4                     # = out_nc
    Wp2 = W + 2
    RC = Wp2 * Cin                    # one padded input row, flattened
    NL = W * Cout                     # lane-dense output row width
    out_dtype = x_nchw.dtype

    # Layout requirements of this kernel (satisfied at the test shapes).
    assert H % 8 == 0, "H must be a multiple of 8 (sublane tile)"
    assert NL % 128 == 0, "W*Cout must be a multiple of 128 (lane-dense store)"

    TB = _pick_images_per_step(N, H)          # images per grid step (MXU M = TB*H)
    G = N // TB                               # grid size

    # ---- input: NCHW -> NHWC -> pad(1) -> flatten rows to (N, H+2, (W+2)*Cin)
    # (pad + transpose touch only the tiny Cin-sized input tensor)
    x = jnp.transpose(x_nchw, (0, 2, 3, 1))
    xp = jnp.pad(x, ((0, 0), (1, 1), (1, 1), (0, 0)))
    x2 = xp.reshape(N, H + 2, RC).astype(compute_dtype)

    # ---- banded conv weight, one (RC, NL) slab per row tap dy:
    #   K index  = (wi_padded, cin)   (matches the flattened padded row layout)
    #   lane idx = (i, w, j, c)       (makes PixelShuffle a pure reshape)
    w_t = jnp.transpose(w_oihw, (2, 3, 1, 0))                    # (3,3,Cin,Cout)
    w_ijc = jnp.transpose(w_t.reshape(3, 3, Cin, C, 2, 2),
                          (0, 1, 2, 4, 5, 3))                    # (dy,dx,cin,i,j,c)
    shift = (jnp.arange(Wp2)[None, :, None] ==
             jnp.arange(3)[:, None, None] + jnp.arange(W)[None, None, :])
    b3 = jnp.einsum('xrw,dxnijc->drniwjc',
                    shift.astype(jnp.float32),
                    w_ijc.astype(jnp.float32)).reshape(3, RC, NL)
    b3 = b3.astype(compute_dtype)                                # (3, RC, NL)

    cparams = pltpu.CompilerParams(
        dimension_semantics=("parallel",),        # no cross-iteration state
        vmem_limit_bytes=32 * 1024 * 1024)        # safe on v5e/v6e/v7x

    # Block specs shared by both passes.  The batch-tile axis carries TB images
    # per step; the banded weight (and later BN scale/bias) never change block
    # index, so single-buffer them to save VMEM (matters most on v7x).
    x_spec = pl.BlockSpec((TB, H + 2, RC), lambda n: (n, 0, 0))
    b_spec = pl.BlockSpec((3, RC, NL), lambda n: (0, 0, 0),
                          pipeline_mode=pl.Buffered(1))

    # ---- pass 1: per-grid-step BN partial statistics (no conv output to HBM)
    sums, sqs = pl.pallas_call(
        _conv_stats_kernel,
        out_shape=(jax.ShapeDtypeStruct((G, 1, NL), jnp.float32),
                   jax.ShapeDtypeStruct((G, 1, NL), jnp.float32)),
        grid_spec=pltpu.PrefetchScalarGridSpec(
            num_scalar_prefetch=0,
            grid=(G,),
            in_specs=[x_spec, b_spec],
            out_specs=(pl.BlockSpec((1, 1, NL), lambda n: (n, 0, 0)),
                       pl.BlockSpec((1, 1, NL), lambda n: (n, 0, 0)))),
        compiler_params=cparams,
    )(x2, b3)

    # ---- BatchNorm2d (training mode): batch statistics, biased variance.
    # Stats stay in f32 regardless of compute_dtype (see review concern).
    count = N * H * W
    s_ijc = sums.reshape(G, 2, W, 2, C).sum(axis=(0, 2))     # per (i, j, c)
    q_ijc = sqs.reshape(G, 2, W, 2, C).sum(axis=(0, 2))
    mean = s_ijc / count
    var = q_ijc / count - mean * mean
    g_ijc = jnp.transpose(gamma.reshape(C, 2, 2), (1, 2, 0))  # channel o=c*4+2i+j
    b_ijc = jnp.transpose(beta.reshape(C, 2, 2), (1, 2, 0))
    scale = g_ijc * lax.rsqrt(var + eps)                      # (2, 2, C)
    bias = b_ijc - mean * scale
    scale_l = jnp.broadcast_to(scale[:, None], (2, W, 2, C)).reshape(1, NL)
    bias_l = jnp.broadcast_to(bias[:, None], (2, W, 2, C)).reshape(1, NL)
    scale_l = scale_l.astype(jnp.float32)
    bias_l = bias_l.astype(jnp.float32)

    sb_spec = pl.BlockSpec((1, NL), lambda n: (0, 0),
                           pipeline_mode=pl.Buffered(1))

    # ---- pass 2: fused conv + BN + ReLU + PixelShuffle, lane-dense output,
    # written directly in the model dtype (no extra f32 writeback).
    out2 = pl.pallas_call(
        _conv_bn_relu_ps_kernel,
        out_shape=jax.ShapeDtypeStruct((N * H, NL), out_dtype),
        grid_spec=pltpu.PrefetchScalarGridSpec(
            num_scalar_prefetch=0,
            grid=(G,),
            in_specs=[x_spec, b_spec, sb_spec, sb_spec],
            out_specs=pl.BlockSpec((TB * H, NL), lambda n: (n, 0))),
        compiler_params=cparams,
    )(x2, b3, scale_l, bias_l)

    # Rows are (n, h); lanes are (i, w, j, c)  ->  the NHWC-shuffled tensor is a
    # pure (free) reshape.  One transpose to NCHW only to match PyTorch layout
    # (keep NHWC for downstream consumers when possible).
    out_nhwc = out2.reshape(N, 2 * H, 2 * W, C)
    return jnp.transpose(out_nhwc, (0, 3, 1, 2))


# --------------------------------------------------------------------------- #
# pure-JAX reference (replicates the PyTorch forward)
# --------------------------------------------------------------------------- #
def reference(x_nchw, w_oihw, gamma, beta, eps=1e-5):
    y = lax.conv_general_dilated(
        x_nchw, w_oihw, window_strides=(1, 1), padding=((1, 1), (1, 1)),
        dimension_numbers=("NCHW", "OIHW", "NCHW"))
    mean = jnp.mean(y, axis=(0, 2, 3), keepdims=True)
    var = jnp.var(y, axis=(0, 2, 3), keepdims=True)  # biased, like PyTorch BN
    y = (y - mean) / jnp.sqrt(var + eps) * gamma.reshape(1, -1, 1, 1) \
        + beta.reshape(1, -1, 1, 1)
    y = jnp.maximum(y, 0.0)
    N, C4, H, W = y.shape
    C = C4 // 4
    y = y.reshape(N, C, 2, 2, H, W).transpose(0, 1, 4, 2, 5, 3)
    return y.reshape(N, C, 2 * H, 2 * W)


if __name__ == "__main__":
    key = jax.random.PRNGKey(0)
    k1, k2, k3, k4 = jax.random.split(key, 4)

    N, in_nc, out_nc, H, W = 2, 4, 8, 16, 16
    Cout = 4 * out_nc  # 32

    x = jax.random.normal(k1, (N, in_nc, H, W), jnp.float32)
    conv_w = 0.1 * jax.random.normal(k2, (Cout, in_nc, 3, 3), jnp.float32)
    gamma = 1.0 + 0.1 * jax.random.normal(k3, (Cout,), jnp.float32)
    beta = 0.1 * jax.random.normal(k4, (Cout,), jnp.float32)

    ref = reference(x, conv_w, gamma, beta)

    # Numeric-reference configuration (f32 MXU inputs): tight check.
    out_f32 = jax.block_until_ready(
        upsample_forward(x, conv_w, gamma, beta, compute_dtype=jnp.float32))
    assert out_f32.shape == (N, out_nc, 2 * H, 2 * W), out_f32.shape
    err32 = float(jnp.max(jnp.abs(out_f32 - ref)))
    assert bool(jnp.allclose(out_f32, ref, rtol=1e-4, atol=1e-4)), \
        "f32 mismatch vs reference: max abs err = " + str(err32)

    # Performance configuration (bf16 MXU inputs, f32 accumulation): loose check.
    out_bf16 = jax.block_until_ready(
        upsample_forward(x, conv_w, gamma, beta, compute_dtype=jnp.bfloat16))
    assert out_bf16.shape == (N, out_nc, 2 * H, 2 * W), out_bf16.shape
    errbf = float(jnp.max(jnp.abs(out_bf16 - ref)))
    assert bool(jnp.allclose(out_bf16, ref, rtol=5e-2, atol=5e-2)), \
        "bf16 mismatch vs reference: max abs err = " + str(errbf)

    print("KERNEL_OK")
</pallas_src>

<mosaic_0001>
module attributes {stable_mosaic.version = 11 : i64} {
  func.func @_conv_stats_kernel(%arg0: i32, %arg1: memref<2x18x72xf32, #tpu.memory_space<vmem>>, %arg2: memref<3x72x512xf32, #tpu.memory_space<vmem>>, %arg3: memref<1x1x512xf32, #tpu.memory_space<vmem>>, %arg4: memref<1x1x512xf32, #tpu.memory_space<vmem>>) attributes {dimension_semantics = [#tpu.dimension_semantics<parallel>], iteration_bounds = array<i64: 1>, scalar_prefetch = 0 : i64, scratch_operands = 0 : i64, tpu.core_type = #tpu.core_type<tc>, window_params = [{transform_indices = @transform_0, window_bounds = array<i64: 2, 18, 72>}, {pipeline_mode = #tpu.pipeline_mode<synchronous>, transform_indices = @transform_1, window_bounds = array<i64: 3, 72, 512>}, {transform_indices = @transform_2, window_bounds = array<i64: 1, 1, 512>}, {transform_indices = @transform_3, window_bounds = array<i64: 1, 1, 512>}]} {
    %cst = arith.constant 0.000000e+00 : f32
    %0 = vector.broadcast %cst : f32 to vector<32x512xf32>
    %c0 = arith.constant 0 : index
    %c0_0 = arith.constant 0 : index
    %c0_1 = arith.constant 0 : index
    %1 = vector.load %arg1[%c0, %c0_0, %c0_1] : memref<2x18x72xf32, #tpu.memory_space<vmem>>, vector<2x16x72xf32>
    %2 = vector.shape_cast %1 : vector<2x16x72xf32> to vector<32x72xf32>
    %c0_2 = arith.constant 0 : index
    %c0_3 = arith.constant 0 : index
    %c0_4 = arith.constant 0 : index
    %3 = vector.load %arg2[%c0_2, %c0_3, %c0_4] : memref<3x72x512xf32, #tpu.memory_space<vmem>>, vector<1x72x512xf32>
    %4 = vector.shape_cast %3 : vector<1x72x512xf32> to vector<72x512xf32>
    %cst_5 = arith.constant dense<0.000000e+00> : vector<32x512xf32>
    %5 = tpu.matmul %2, %4, %cst_5 {dimension_numbers = #tpu.dot_dimension_numbers<[1], [0], [0], [1], [0, 0, 1, 1], [], []>} : vector<32x72xf32>, vector<72x512xf32>, vector<32x512xf32> -> vector<32x512xf32>
    %6 = arith.addf %0, %5 : vector<32x512xf32>
    %c0_6 = arith.constant 0 : index
    %c1 = arith.constant 1 : index
    %c0_7 = arith.constant 0 : index
    %7 = vector.load %arg1[%c0_6, %c1, %c0_7] : memref<2x18x72xf32, #tpu.memory_space<vmem>>, vector<2x16x72xf32>
    %8 = vector.shape_cast %7 : vector<2x16x72xf32> to vector<32x72xf32>
    %c1_8 = arith.constant 1 : index
    %c0_9 = arith.constant 0 : index
    %c0_10 = arith.constant 0 : index
    %9 = vector.load %arg2[%c1_8, %c0_9, %c0_10] : memref<3x72x512xf32, #tpu.memory_space<vmem>>, vector<1x72x512xf32>
    %10 = vector.shape_cast %9 : vector<1x72x512xf32> to vector<72x512xf32>
    %cst_11 = arith.constant dense<0.000000e+00> : vector<32x512xf32>
    %11 = tpu.matmul %8, %10, %cst_11 {dimension_numbers = #tpu.dot_dimension_numbers<[1], [0], [0], [1], [0, 0, 1, 1], [], []>} : vector<32x72xf32>, vector<72x512xf32>, vector<32x512xf32> -> vector<32x512xf32>
    %12 = arith.addf %6, %11 : vector<32x512xf32>
    %c0_12 = arith.constant 0 : index
    %c2 = arith.constant 2 : index
    %c0_13 = arith.constant 0 : index
    %13 = vector.load %arg1[%c0_12, %c2, %c0_13] : memref<2x18x72xf32, #tpu.memory_space<vmem>>, vector<2x16x72xf32>
    %14 = vector.shape_cast %13 : vector<2x16x72xf32> to vector<32x72xf32>
    %c2_14 = arith.constant 2 : index
    %c0_15 = arith.constant 0 : index
    %c0_16 = arith.constant 0 : index
    %15 = vector.load %arg2[%c2_14, %c0_15, %c0_16] : memref<3x72x512xf32, #tpu.memory_space<vmem>>, vector<1x72x512xf32>
    %16 = vector.shape_cast %15 : vector<1x72x512xf32> to vector<72x512xf32>
    %cst_17 = arith.constant dense<0.000000e+00> : vector<32x512xf32>
    %17 = tpu.matmul %14, %16, %cst_17 {dimension_numbers = #tpu.dot_dimension_numbers<[1], [0], [0], [1], [0, 0, 1, 1], [], []>} : vector<32x72xf32>, vector<72x512xf32>, vector<32x512xf32> -> vector<32x512xf32>
    %18 = arith.addf %12, %17 : vector<32x512xf32>
    %cst_18 = arith.constant dense<0.000000e+00> : vector<512xf32>
    %19 = vector.multi_reduction <add>, %18, %cst_18 [0] : vector<32x512xf32> to vector<512xf32>
    %20 = vector.shape_cast %19 : vector<512xf32> to vector<1x512xf32>
    %c0_19 = arith.constant 0 : index
    %c0_20 = arith.constant 0 : index
    %c0_21 = arith.constant 0 : index
    %21 = vector.load %arg3[%c0_19, %c0_20, %c0_21] : memref<1x1x512xf32, #tpu.memory_space<vmem>>, vector<1x1x512xf32>
    %22 = vector.shape_cast %21 : vector<1x1x512xf32> to vector<1x512xf32>
    %23 = vector.shape_cast %20 : vector<1x512xf32> to vector<1x1x512xf32>
    tpu.vector_store %arg3[%c0_19, %c0_20, %c0_21], %23 {strides = array<i32>} : memref<1x1x512xf32, #tpu.memory_space<vmem>>, vector<1x1x512xf32>,
    %24 = arith.mulf %18, %18 : vector<32x512xf32>
    %cst_22 = arith.constant dense<0.000000e+00> : vector<512xf32>
    %25 = vector.multi_reduction <add>, %24, %cst_22 [0] : vector<32x512xf32> to vector<512xf32>
    %26 = vector.shape_cast %25 : vector<512xf32> to vector<1x512xf32>
    %c0_23 = arith.constant 0 : index
    %c0_24 = arith.constant 0 : index
    %c0_25 = arith.constant 0 : index
    %27 = vector.load %arg4[%c0_23, %c0_24, %c0_25] : memref<1x1x512xf32, #tpu.memory_space<vmem>>, vector<1x1x512xf32>
    %28 = vector.shape_cast %27 : vector<1x1x512xf32> to vector<1x512xf32>
    %29 = vector.shape_cast %26 : vector<1x512xf32> to vector<1x1x512xf32>
    tpu.vector_store %arg4[%c0_23, %c0_24, %c0_25], %29 {strides = array<i32>} : memref<1x1x512xf32, #tpu.memory_space<vmem>>, vector<1x1x512xf32>,
    return
  }
  func.func @transform_0(%arg0: i32) -> (i32, i32, i32) {
    %c0_i32 = arith.constant 0 : i32
    %c0_i32_0 = arith.constant 0 : i32
    %c0_i32_1 = arith.constant 0 : i32
    return %arg0, %c0_i32, %c0_i32_0 : i32, i32, i32
  }
  func.func @transform_1(%arg0: i32) -> (i32, i32, i32) {
    %c0_i32 = arith.constant 0 : i32
    %c0_i32_0 = arith.constant 0 : i32
    %c0_i32_1 = arith.constant 0 : i32
    %c0_i32_2 = arith.constant 0 : i32
    return %c0_i32, %c0_i32_0, %c0_i32_1 : i32, i32, i32
  }
  func.func @transform_2(%arg0: i32) -> (i32, i32, i32) {
    %c0_i32 = arith.constant 0 : i32
    %c0_i32_0 = arith.constant 0 : i32
    %c0_i32_1 = arith.constant 0 : i32
    return %arg0, %c0_i32, %c0_i32_0 : i32, i32, i32
  }
  func.func @transform_3(%arg0: i32) -> (i32, i32, i32) {
    %c0_i32 = arith.constant 0 : i32
    %c0_i32_0 = arith.constant 0 : i32
    %c0_i32_1 = arith.constant 0 : i32
    return %arg0, %c0_i32, %c0_i32_0 : i32, i32, i32
  }
}

</mosaic_0001>

<bundles_post_ra>
// kernel: tpu_custom_call.1
= control target key start
LH: loop header
LB: loop body
LE: loop exit
PB: predicated region body
PF: predicated region fallthrough
CT: control target
= control target key end

     0   :  { %9 = vsyncpa [#allocation3], 0  ;;  %s1315_s0 = inlined_call_operand.vmem [shape: f32[2,18,72], index: 0, kind: input, shape index: {}]   ;;  %s1316_s1 = inlined_call_operand.hbm [shape: f32[3,72,512], index: 1, kind: input, shape index: {}]   ;;  %s1317_s2 = inlined_call_operand.hbm [shape: f32[1,1,512], index: 2, kind: output, shape index: {0}]   ;;  %s1318_s3 = inlined_call_operand.hbm [shape: f32[1,1,512], index: 3, kind: output, shape index: {1}]  }
   0x1   :  { %10 = vsyncpa [#allocation4], 0 }
   0x2   :  { %11 = vsyncpa [#allocation7], 0  ;;  %s1150_s12 = smov [#allocation2]   ;;  %s1078_s16 = scalar_lea.hbm %s1316_s1, 13824 }
   0x3   :  { %s19_s13 = sshll.u32 %s1150_s12, 4  ;;  %p1079_p0 = scmp.ne.s32.totalorder %s1316_s1, %s1078_s16  ;;  %s20_s13 = int_to_ptr.vmem [resolvable:$true] %s19_s13 }
   0x4   :  { %p1082_p1 = scmp.lt.u32.totalorder %s1078_s16, %s1316_s1 }
   0x6   :  { %p1084_p2 = pnand %p1082_p1, %p1079_p0 }
   0x8   :  { %1087 = shalt.err (!%p1084_p2)
}
   0x9   :  { %s1088_s21 = scalar_lea.vmem %s20_s13, 13824  ;;  %p1093_p4 = scmp.lt.s32.totalorder %s20_s13, %s20_s13 }
   0xa   :  { %p1089_p3 = scmp.ne.s32.totalorder %s20_s13, %s1088_s21  ;;  %p1094_p5 = scmp.lt.s32.totalorder %s1088_s21, %s1088_s21 }
   0xc   :  { %p1095_p6 = por %p1094_p5, %p1093_p4 }
   0xe   :  { %p1096_p7 = pnand %p1095_p6, %p1089_p3 }
  0x10   :  { %1099 = shalt.err (!%p1096_p7)
}
  0x11   :  { %s1151_s22 = smov 512   ;;  %s1152_s23 = smov 32  }
  0x12   :  { %25 = dma.hbm_to_vmem [thread:$0]  %s1316_s1, 13824, %s20_s13, [#allocation3], %s1151_s22, %s1151_s22, %s1152_s23  }
  0x13   :  { %1144 = dma.done.wait [#allocation3], 13824  }
  0x14   :  { %1145 = vsyncadd [#allocation3], 4294953472  ;;  %v1153_v0 = vmov 0.0   ;;  %v75_v1 = vld [vmem:[#allocation2 + $0x128] sm:$0xff]  ;;  %v77_v3 = vld [vmem:[#allocation2 + $0x138] sm:$0xff]  ;;  %vm110_vm0 = vcmask 588800  }
  0x15   :  { %187 = vmatprep.mubr.f32.mxu0 %v1153_v0  ;;  %276 = vmatprep.mubr.f32.mxu1 %v1153_v0  ;;  %v79_v2 = vld [vmem:[#allocation2 + $0x148] sm:$0xff]  ;;  %v81_v5 = vld [vmem:[#allocation2 + $0x158] sm:$0xff]  ;;  %v74_v6 = vld [vmem:[#allocation2 + $0x120] sm:$0xff]  ;;  %s1156_s23 = smov [#allocation6]  }
  0x16   :  { %v943_v4 = vpack.c.bf16 %v79_v2, %v75_v1  ;;  %v78_v7 = vld [vmem:[#allocation2 + $0x140] sm:$0xff]  ;;  %v959_v8 = vpack.c.bf16 %v81_v5, %v77_v3  ;;  %v76_v10 = vld [vmem:[#allocation2 + $0x130] sm:$0xff]  ;;  %v83_v12 = vld [vmem:[#allocation2 + $0x168] sm:$0xff]  ;;  %s906_s24 = sshll.u32 %s1156_s23, 4  ;;  %s907_s24 = int_to_ptr.vmem [resolvable:$true] %s906_s24 }
  0x17   :  { %v945_v9 = vpack.c.bf16 %v78_v7, %v74_v6  ;;  %v80_v11 = vld [vmem:[#allocation2 + $0x150] sm:$0xff]  ;;  %v87_v14 = vld [vmem:[#allocation2 + $0x188] sm:$0xff]  ;;  %v85_v15 = vld [vmem:[#allocation2 + $0x178] sm:$0xff] }
  0x18   :  { %944 = vmatprep.subr.bf16.mxu0 %v943_v4  ;;  %v961_v13 = vpack.c.bf16 %v80_v11, %v76_v10  ;;  %v89_v16 = vld [vmem:[#allocation2 + $0x198] sm:$0xff]  ;;  %960 = vmatprep.subr.bf16.mxu1 %v959_v8  ;;  %v947_v17 = vpack.c.bf16 %v87_v14, %v83_v12  ;;  %v82_v19 = vld [vmem:[#allocation2 + $0x160] sm:$0xff]  ;;  %v84_v21 = vld [vmem:[#allocation2 + $0x170] sm:$0xff] }
  0x19   :  { %946 = vmatpush1.bf16.msra.mxu0 %v945_v9  ;;  %v963_v18 = vpack.c.bf16 %v89_v16, %v85_v15  ;;  %v86_v20 = vld [vmem:[#allocation2 + $0x180] sm:$0xff]  ;;  %v88_v23 = vld [vmem:[#allocation2 + $0x190] sm:$0xff]  ;;  %v91_v24 = vld [vmem:[#allocation2 + $0x1a8] sm:$0xff] }
  0x1a   :  { %962 = vmatpush1.bf16.msra.mxu1 %v961_v13  ;;  %v949_v22 = vpack.c.bf16 %v86_v20, %v82_v19  ;;  %v95_v25 = vld [vmem:[#allocation2 + $0x1c8] sm:$0xff]  ;;  %948 = vmatprep.subr.bf16.mxu0 %v947_v17  ;;  %v965_v26 = vpack.c.bf16 %v88_v23, %v84_v21  ;;  %v93_v28 = vld [vmem:[#allocation2 + $0x1b8] sm:$0xff]  ;;  %v90_v30 = vld [vmem:[#allocation2 + $0x1a0] sm:$0xff] }
  0x1b   :  { %964 = vmatprep.subr.bf16.mxu1 %v963_v18  ;;  %v951_v27 = vpack.c.bf16 %v95_v25, %v91_v24  ;;  %v97_v29 = vld [vmem:[#allocation2 + $0x1d8] sm:$0xff]  ;;  %v94_v32 = vld [vmem:[#allocation2 + $0x1c0] sm:$0xff]  ;;  %v92_v33 = vld [vmem:[#allocation2 + $0x1b0] sm:$0xff] }
  0x1c   :  { %v967_v31 = vpack.c.bf16 %v97_v29, %v93_v28  ;;  %v96_v34 = vld [vmem:[#allocation2 + $0x1d0] sm:$0xff]  ;;  %v953_v35 = vpack.c.bf16 %v94_v32, %v90_v30  ;;  %v99_v36 = vld [vmem:[#allocation2 + $0x1e8] sm:$0xff]  ;;  %v101_v38 = vld [vmem:[#allocation2 + $0x1f8] sm:$0xff] }
  0x1d   :  { %950 = vmatpush1.bf16.msra.mxu0 %v949_v22  ;;  %v103_v37 = vld [vmem:[#allocation2 + $0x208] sm:$0xff]  ;;  %v969_v39 = vpack.c.bf16 %v96_v34, %v92_v33  ;;  %v105_v41 = vld [vmem:[#allocation2 + $0x218] sm:$0xff]  ;;  %v98_v42 = vld [vmem:[#allocation2 + $0x1e0] sm:$0xff] }
  0x1e   :  { %966 = vmatpush1.bf16.msra.mxu1 %v965_v26  ;;  %952 = vmatprep.subr.bf16.mxu0 %v951_v27  ;;  %v955_v40 = vpack.c.bf16 %v103_v37, %v99_v36  ;;  %v102_v43 = vld [vmem:[#allocation2 + $0x200] sm:$0xff]  ;;  %v971_v44 = vpack.c.bf16 %v105_v41, %v101_v38  ;;  %v100_v45 = vld [vmem:[#allocation2 + $0x1f0] sm:$0xff]  ;;  %v107_v49 = vld [vmem:[#allocation2 + $0x228] sm:$0xff] }
  0x1f   :  { %968 = vmatprep.subr.bf16.mxu1 %v967_v31  ;;  %v104_v46 = vld [vmem:[#allocation2 + $0x210] sm:$0xff]  ;;  %v957_v47 = vpack.c.bf16 %v102_v43, %v98_v42  ;;  %v109_v50 = vld [vmem:[#allocation2 + $0x238] sm:$0xff]  ;;  %v34_v51 = vld [vmem:[#allocation2 + $0x8] sm:$0xff] }
  0x20   :  { %v973_v48 = vpack.c.bf16 %v104_v46, %v100_v45  ;;  %v38_v52 = vld [vmem:[#allocation2 + $0x28] sm:$0xff]  ;;  %v106_v53 = vld [vmem:[#allocation2 + $0x220] sm:$0xff]  ;;  %v36_v54 = vld [vmem:[#allocation2 + $0x18] sm:$0xff] }
  0x21   :  { %954 = vmatpush1.bf16.msra.mxu0 %v953_v35  ;;  %v40_v55 = vld [vmem:[#allocation2 + $0x38] sm:$0xff]  ;;  %v33_v56 = vld [vmem:[#allocation2] sm:$0xff]  ;;  %v35_v58 = vld [vmem:[#allocation2 + $0x10] sm:$0xff]  ;;  %v975_v59 = vpack.c.bf16 %v38_v52, %v34_v51 }
  0x22   :  { %970 = vmatpush1.bf16.msra.mxu1 %v969_v39  ;;  %956 = vmatprep.subr.bf16.mxu0 %v955_v40  ;;  %v37_v57 = vld [vmem:[#allocation2 + $0x20] sm:$0xff]  ;;  %v39_v60 = vld [vmem:[#allocation2 + $0x30] sm:$0xff]  ;;  %v42_v61 = vld [vmem:[#allocation2 + $0x48] sm:$0xff]  ;;  %v991_v1 = vpack.c.bf16 %v40_v55, %v36_v54 }
  0x23   :  { %972 = vmatprep.subr.bf16.mxu1 %v971_v44  ;;  %v46_v62 = vld [vmem:[#allocation2 + $0x68] sm:$0xff]  ;;  %v108_v63 = vld [vmem:[#allocation2 + $0x230] sm:$0xff]  ;;  %v44_v2 = vld [vmem:[#allocation2 + $0x58] sm:$0xff]  ;;  %v977_v5 = vpack.c.bf16 %v37_v57, %v33_v56  ;;  %v993_v6 = vpack.c.bf16 %v39_v60, %v35_v58 }
  0x24   :  { %v48_v3 = vld [vmem:[#allocation2 + $0x78] sm:$0xff]  ;;  %v69_v4 = vld [vmem:[%s1315_s0 + $0x1] sm:$0xff]  ;;  %v979_v7 = vpack.c.bf16 %v46_v62, %v42_v61  ;;  %v43_v10 = vld [vmem:[#allocation2 + $0x50] sm:$0xff] }
  0x25   :  { %958 = vmatpush1.bf16.msra.mxu0 %v957_v47  ;;  %v41_v8 = vld [vmem:[#allocation2 + $0x40] sm:$0xff]  ;;  %v995_v11 = vpack.c.bf16 %v48_v3, %v44_v2  ;;  %v47_v12 = vld [vmem:[#allocation2 + $0x70] sm:$0xff]  ;;  %v50_v13 = vld [vmem:[#allocation2 + $0x88] sm:$0xff] }
  0x26   :  { %974 = vmatpush1.bf16.msra.mxu1 %v973_v48  ;;  %139 = vmatprep.subr.mxu0 %v107_v49  ;;  %v45_v9 = vld [vmem:[#allocation2 + $0x60] sm:$0xff]  ;;  %v54_v14 = vld [vmem:[#allocation2 + $0xa8] sm:$0xff]  ;;  %v52_v15 = vld [vmem:[#allocation2 + $0x98] sm:$0xff]  ;;  %v997_v19 = vpack.c.bf16 %v47_v12, %v43_v10 }
  0x27   :  { %228 = vmatprep.subr.mxu1 %v109_v50  ;;  %v56_v16 = vld [vmem:[#allocation2 + $0xb8] sm:$0xff]  ;;  %v981_v17 = vpack.c.bf16 %v45_v9, %v41_v8  ;;  %v70_v18 = vld [vmem:[%s1315_s0 + $0x9] sm:$0xff]  ;;  %v983_v20 = vpack.c.bf16 %v54_v14, %v50_v13  ;;  %v49_v21 = vld [vmem:[#allocation2 + $0x80] sm:$0xff] }
  0x28   :  { %v53_v22 = vld [vmem:[#allocation2 + $0xa0] sm:$0xff]  ;;  %v51_v23 = vld [vmem:[#allocation2 + $0x90] sm:$0xff]  ;;  %v999_v24 = vpack.c.bf16 %v56_v16, %v52_v15  ;;  %v58_v26 = vld [vmem:[#allocation2 + $0xc8] sm:$0xff] }
  0x29   :  { %140 = vmatpush1.msra.mxu0 %v106_v53  ;;  %v55_v25 = vld [vmem:[#allocation2 + $0xb0] sm:$0xff]  ;;  %v62_v27 = vld [vmem:[#allocation2 + $0xe8] sm:$0xff]  ;;  %v60_v28 = vld [vmem:[#allocation2 + $0xd8] sm:$0xff]  ;;  %v985_v30 = vpack.c.bf16 %v53_v22, %v49_v21 }
  0x2a   :  { %229 = vmatpush1.msra.mxu1 %v108_v63  ;;  %976 = vmatprep.subr.bf16.mxu0 %v975_v59  ;;  %v64_v29 = vld [vmem:[#allocation2 + $0xf8] sm:$0xff]  ;;  %v1001_v32 = vpack.c.bf16 %v55_v25, %v51_v23  ;;  %v987_v33 = vpack.c.bf16 %v62_v27, %v58_v26  ;;  %v57_v34 = vld [vmem:[#allocation2 + $0xc0] sm:$0xff]  ;;  %v59_v37 = vld [vmem:[#allocation2 + $0xd0] sm:$0xff] }
  0x2b   :  { %992 = vmatprep.subr.bf16.mxu1 %v991_v1  ;;  %919 = vmatmul.mubr.msk.f32.vlgmr.msra.gmra.mrb[0].mxu0 %vm110_vm0, %v69_v4  ;;  %v71_v31 = vld [vmem:[%s1315_s0 + $0x19] sm:$0xff]  ;;  %v1003_v36 = vpack.c.bf16 %v64_v29, %v60_v28  ;;  %v63_v38 = vld [vmem:[#allocation2 + $0xf0] sm:$0xff]  ;;  %v72_v40 = vld [vmem:[%s1315_s0 + $0x21] sm:$0xff] }
  0x2c   :  { %923 = vmatmul.mubr.msk.f32.vlgmr.msra.gmra.mrb[0].mxu1 %vm110_vm0, %v69_v4  ;;  %978 = vmatpush1.bf16.msra.mxu0 %v977_v5  ;;  %v61_v35 = vld [vmem:[#allocation2 + $0xe0] sm:$0xff]  ;;  %v1005_v41 = vpack.c.bf16 %v63_v38, %v59_v37  ;;  %v66_v42 = vld [vmem:[#allocation2 + $0x108] sm:$0xff]  ;;  %v68_v43 = vld [vmem:[#allocation2 + $0x118] sm:$0xff] }
  0x2d   :  { %994 = vmatpush1.bf16.msra.mxu1 %v993_v6  ;;  %980 = vmatprep.subr.bf16.mxu0 %v979_v7  ;;  %v989_v39 = vpack.c.bf16 %v61_v35, %v57_v34  ;;  %v497_v44 = vld [vmem:[#allocation2 + $0x248] sm:$0xff]  ;;  %v65_v46 = vld [vmem:[#allocation2 + $0x100] sm:$0xff]  ;;  %v499_v47 = vld [vmem:[#allocation2 + $0x258] sm:$0xff] }
  0x2e   :  { %996 = vmatprep.subr.bf16.mxu1 %v995_v11  ;;  %193 = vmatprep.mubr.f32.mxu0 %v1153_v0  ;;  %v501_v45 = vld [vmem:[#allocation2 + $0x268] sm:$0xff]  ;;  %v503_v48 = vld [vmem:[#allocation2 + $0x278] sm:$0xff]  ;;  %v496_v49 = vld [vmem:[#allocation2 + $0x240] sm:$0xff] }
  0x2f   :  { %282 = vmatprep.mubr.f32.mxu1 %v1153_v0  ;;  %920 = vmatmul.mubr.msk.f32.gmra.mrb[2].mxu0 %vm110_vm0, %v70_v18  ;;  %v500_v50 = vld [vmem:[#allocation2 + $0x260] sm:$0xff]  ;;  %v498_v51 = vld [vmem:[#allocation2 + $0x250] sm:$0xff]  ;;  %v1007_v52 = vpack.c.bf16 %v501_v45, %v497_v44  ;;  %v505_v54 = vld [vmem:[#allocation2 + $0x288] sm:$0xff]  ;;  %v1023_v57 = vpack.c.bf16 %v503_v48, %v499_v47 }
  0x30   :  { %982 = vmatpush1.bf16.msra.mxu0 %v981_v17  ;;  %924 = vmatmul.mubr.msk.f32.gmra.mrb[2].mxu1 %vm110_vm0, %v70_v18  ;;  %v502_v53 = vld [vmem:[#allocation2 + $0x270] sm:$0xff]  ;;  %v509_v55 = vld [vmem:[#allocation2 + $0x2a8] sm:$0xff]  ;;  %v507_v58 = vld [vmem:[#allocation2 + $0x298] sm:$0xff]  ;;  %v1009_v61 = vpack.c.bf16 %v500_v50, %v496_v49  ;;  %v1154_v49 = vmov 1966171168  }
  0x31   :  { %998 = vmatpush1.bf16.msra.mxu1 %v997_v19  ;;  %984 = vmatprep.subr.bf16.mxu0 %v983_v20  ;;  %v67_v56 = vld [vmem:[#allocation2 + $0x110] sm:$0xff]  ;;  %v511_v59 = vld [vmem:[#allocation2 + $0x2b8] sm:$0xff]  ;;  %v29_v60 = vld [vmem:[%s1315_s0] sm:$0xff]  ;;  %v1025_v62 = vpack.c.bf16 %v502_v53, %v498_v51  ;;  %v1011_v63 = vpack.c.bf16 %v509_v55, %v505_v54  ;;  %v781_v50 = vunpack.c.l.s4 %v1154_v49  ;;  %v783_v51 = vlaneseq }
  0x32   :  { %1000 = vmatprep.subr.bf16.mxu1 %v999_v24  ;;  %199 = vmatprep.mubr.f32.mxu0 %v1153_v0  ;;  %v504_v1 = vld [vmem:[#allocation2 + $0x280] sm:$0xff]  ;;  %v506_v3 = vld [vmem:[#allocation2 + $0x290] sm:$0xff]  ;;  %v1027_v4 = vpack.c.bf16 %v511_v59, %v507_v58  ;;  %v513_v6 = vld [vmem:[#allocation2 + $0x2c8] sm:$0xff] }
  0x33   :  { %288 = vmatprep.mubr.f32.mxu1 %v1153_v0  ;;  %921 = vmatmul.mubr.msk.f32.gmra.mrb[4].mxu0 %vm110_vm0, %v71_v31  ;;  %v508_v2 = vld [vmem:[#allocation2 + $0x2a0] sm:$0xff]  ;;  %v510_v5 = vld [vmem:[#allocation2 + $0x2b0] sm:$0xff]  ;;  %v517_v7 = vld [vmem:[#allocation2 + $0x2e8] sm:$0xff]  ;;  %vm1281_vm1 = vcmp.lt.s32.totalorder %v783_v51, 512 }
  0x34   :  { %986 = vmatpush1.bf16.msra.mxu0 %v985_v30  ;;  %925 = vmatmul.mubr.msk.f32.gmra.mrb[4].mxu1 %vm110_vm0, %v71_v31  ;;  %v515_v8 = vld [vmem:[#allocation2 + $0x2d8] sm:$0xff]  ;;  %v1013_v10 = vpack.c.bf16 %v508_v2, %v504_v1  ;;  %v30_v11 = vld [vmem:[%s1315_s0 + $0x8] sm:$0xff]  ;;  %v1029_v12 = vpack.c.bf16 %v510_v5, %v506_v3  ;;  %v1015_v13 = vpack.c.bf16 %v517_v7, %v513_v6  ;;  %v512_v14 = vld [vmem:[#allocation2 + $0x2c0] sm:$0xff]  ;;  %v782_v6 = vunpack.c.0.s8 %v781_v50 }
  0x35   :  { %1002 = vmatpush1.bf16.msra.mxu1 %v1001_v32  ;;  %988 = vmatprep.subr.bf16.mxu0 %v987_v33  ;;  %v519_v9 = vld [vmem:[#allocation2 + $0x2f8] sm:$0xff]  ;;  %v516_v15 = vld [vmem:[#allocation2 + $0x2e0] sm:$0xff]  ;;  %v514_v16 = vld [vmem:[#allocation2 + $0x2d0] sm:$0xff] }
  0x36   :  { %1004 = vmatprep.subr.bf16.mxu1 %v1003_v36  ;;  %205 = vmatprep.mubr.f32.mxu0 %v1153_v0  ;;  %v1031_v17 = vpack.c.bf16 %v519_v9, %v515_v8  ;;  %v518_v18 = vld [vmem:[#allocation2 + $0x2f0] sm:$0xff]  ;;  %v521_v19 = vld [vmem:[#allocation2 + $0x308] sm:$0xff]  ;;  %v523_v21 = vld [vmem:[#allocation2 + $0x318] sm:$0xff]  ;;  %v1017_v23 = vpack.c.bf16 %v516_v15, %v512_v14 }
  0x37   :  { %294 = vmatprep.mubr.f32.mxu1 %v1153_v0  ;;  %922 = vmatmul.mubr.msk.f32.gmra.mrb[6].mxu0 %vm110_vm0, %v72_v40  ;;  %v525_v20 = vld [vmem:[#allocation2 + $0x328] sm:$0xff]  ;;  %v527_v22 = vld [vmem:[#allocation2 + $0x338] sm:$0xff]  ;;  %v1033_v25 = vpack.c.bf16 %v518_v18, %v514_v16  ;;  %v520_v27 = vld [vmem:[#allocation2 + $0x300] sm:$0xff] }
  0x38   :  { %990 = vmatpush1.bf16.msra.mxu0 %v989_v39  ;;  %926 = vmatmul.mubr.msk.f32.gmra.mrb[6].mxu1 %vm110_vm0, %v72_v40  ;;  %v31_v24 = vld [vmem:[%s1315_s0 + $0x18] sm:$0xff]  ;;  %v1019_v26 = vpack.c.bf16 %v525_v20, %v521_v19  ;;  %v524_v28 = vld [vmem:[#allocation2 + $0x320] sm:$0xff]  ;;  %v1035_v29 = vpack.c.bf16 %v527_v22, %v523_v21  ;;  %v522_v30 = vld [vmem:[#allocation2 + $0x310] sm:$0xff] }
  0x39   :  { %1006 = vmatpush1.bf16.msra.mxu1 %v1005_v41  ;;  %329 = vmatprep.subr.mxu0 %v66_v42  ;;  %v526_v31 = vld [vmem:[#allocation2 + $0x330] sm:$0xff]  ;;  %v1021_v32 = vpack.c.bf16 %v524_v28, %v520_v27  ;;  %v32_v33 = vld [vmem:[%s1315_s0 + $0x20] sm:$0xff]  ;;  %v529_v35 = vld [vmem:[#allocation2 + $0x348] sm:$0xff] }
  0x3a   :  { %418 = vmatprep.subr.mxu1 %v68_v43  ;;  %377 = vmatprep.mubr.f32.mxu0 %v1153_v0  ;;  %v1037_v34 = vpack.c.bf16 %v526_v31, %v522_v30  ;;  %v531_v36 = vld [vmem:[#allocation2 + $0x358] sm:$0xff]  ;;  %v528_v37 = vld [vmem:[#allocation2 + $0x340] sm:$0xff]  ;;  %v530_v38 = vld [vmem:[#allocation2 + $0x350] sm:$0xff] }
  0x3b   :  { %466 = vmatprep.mubr.f32.mxu1 %v1153_v0  ;;  %v491_v39 = vld [vmem:[%s1315_s0 + $0x2] sm:$0xff]  ;;  %v492_v40 = vld [vmem:[%s1315_s0 + $0xa] sm:$0xff]  ;;  %v493_v41 = vld [vmem:[%s1315_s0 + $0x1a] sm:$0xff] }
  0x3c   :  { %330 = vmatpush1.msra.mxu0 %v65_v46  ;;  %v494_v42 = vld [vmem:[%s1315_s0 + $0x22] sm:$0xff]  ;;  %s1155_s0 = smov [#allocation5]  }
  0x3d   :  { %419 = vmatpush1.msra.mxu1 %v67_v56  ;;  %1008 = vmatprep.subr.bf16.mxu0 %v1007_v52  ;;  %s896_s22 = sshll.u32 %s1155_s0, 4  ;;  %s897_s22 = int_to_ptr.vmem [resolvable:$true] %s896_s22 }
  0x3e   :  { %1024 = vmatprep.subr.bf16.mxu1 %v1023_v57  ;;  %927 = vmatmul.mubr.msk.f32.vlgmr.msra.gmra.mrb[0].mxu0 %vm110_vm0, %v29_v60  ;;  %s1100_s25 = scalar_lea.vmem %s897_s22, 64  ;;  %p1105_p9 = scmp.lt.s32.totalorder %s897_s22, %s897_s22 }
  0x3f   :  { %931 = vmatmul.mubr.msk.f32.vlgmr.msra.gmra.mrb[0].mxu1 %vm110_vm0, %v29_v60  ;;  %1010 = vmatpush1.bf16.msra.mxu0 %v1009_v61  ;;  %p1101_p8 = scmp.ne.s32.totalorder %s897_s22, %s1100_s25  ;;  %p1106_p10 = scmp.lt.s32.totalorder %s1100_s25, %s1100_s25 }
  0x40   :  { %1026 = vmatpush1.bf16.msra.mxu1 %v1025_v62  ;;  %1012 = vmatprep.subr.bf16.mxu0 %v1011_v63 }
  0x41   :  { %1028 = vmatprep.subr.bf16.mxu1 %v1027_v4  ;;  %383 = vmatprep.mubr.f32.mxu0 %v1153_v0  ;;  %p1107_p11 = por %p1106_p10, %p1105_p9 }
  0x42   :  { %472 = vmatprep.mubr.f32.mxu1 %v1153_v0  ;;  %928 = vmatmul.mubr.msk.f32.gmra.mrb[2].mxu0 %vm110_vm0, %v30_v11 }
  0x43   :  { %1014 = vmatpush1.bf16.msra.mxu0 %v1013_v10  ;;  %932 = vmatmul.mubr.msk.f32.gmra.mrb[2].mxu1 %vm110_vm0, %v30_v11  ;;  %p1108_p12 = pnand %p1107_p11, %p1101_p8 }
  0x44   :  { %1030 = vmatpush1.bf16.msra.mxu1 %v1029_v12  ;;  %1016 = vmatprep.subr.bf16.mxu0 %v1015_v13  ;;  %v784_v12 = vshrl.u32 %v783_v51, 7 }
  0x45   :  { %1032 = vmatprep.subr.bf16.mxu1 %v1031_v17  ;;  %389 = vmatprep.mubr.f32.mxu0 %v1153_v0 }
  0x46   :  { %478 = vmatprep.mubr.f32.mxu1 %v1153_v0  ;;  %929 = vmatmul.mubr.msk.f32.gmra.mrb[4].mxu0 %vm110_vm0, %v31_v24 }
  0x47   :  { %1018 = vmatpush1.bf16.msra.mxu0 %v1017_v23  ;;  %933 = vmatmul.mubr.msk.f32.gmra.mrb[4].mxu1 %vm110_vm0, %v31_v24 }
  0x48   :  { %1034 = vmatpush1.bf16.msra.mxu1 %v1033_v25  ;;  %1020 = vmatprep.subr.bf16.mxu0 %v1019_v26 }
  0x49   :  { %1036 = vmatprep.subr.bf16.mxu1 %v1035_v29  ;;  %395 = vmatprep.mubr.f32.mxu0 %v1153_v0  ;;  %v1274_v29 = vsub.s32 %v782_v6, %v784_v12 }
  0x4a   :  { %484 = vmatprep.mubr.f32.mxu1 %v1153_v0  ;;  %930 = vmatmul.mubr.msk.f32.gmra.mrb[6].mxu0 %vm110_vm0, %v32_v33 }
  0x4b   :  { %1022 = vmatpush1.bf16.msra.mxu0 %v1021_v32  ;;  %934 = vmatmul.mubr.msk.f32.gmra.mrb[6].mxu1 %vm110_vm0, %v32_v33 }
  0x4c   :  { %1038 = vmatpush1.bf16.msra.mxu1 %v1037_v34  ;;  %560 = vmatprep.subr.mxu0 %v529_v35 }
  0x4d   :  { %649 = vmatprep.subr.mxu1 %v531_v36  ;;  %608 = vmatprep.mubr.f32.mxu0 %v1153_v0 }
  0x4e   :  { %697 = vmatprep.mubr.f32.mxu1 %v1153_v0 }
  0x4f   :  { %561 = vmatpush1.msra.mxu0 %v528_v37 }
  0x50   :  { %650 = vmatpush1.msra.mxu1 %v530_v38  ;;  %935 = vmatmul.mubr.msk.f32.vlgmr.msra.gmra.mrb[0].mxu0 %vm110_vm0, %v491_v39 }
  0x51   :  { %939 = vmatmul.mubr.msk.f32.vlgmr.msra.gmra.mrb[0].mxu1 %vm110_vm0, %v491_v39  ;;  %614 = vmatprep.mubr.f32.mxu0 %v1153_v0 }
  0x52   :  { %703 = vmatprep.mubr.f32.mxu1 %v1153_v0 }
  0x54   :  { %936 = vmatmul.mubr.msk.f32.gmra.mrb[2].mxu0 %vm110_vm0, %v492_v40 }
  0x55   :  { %940 = vmatmul.mubr.msk.f32.gmra.mrb[2].mxu1 %vm110_vm0, %v492_v40  ;;  %620 = vmatprep.mubr.f32.mxu0 %v1153_v0 }
  0x56   :  { %709 = vmatprep.mubr.f32.mxu1 %v1153_v0 }
  0x58   :  { %937 = vmatmul.mubr.msk.f32.gmra.mrb[4].mxu0 %vm110_vm0, %v493_v41 }
  0x59   :  { %941 = vmatmul.mubr.msk.f32.gmra.mrb[4].mxu1 %vm110_vm0, %v493_v41  ;;  %626 = vmatprep.mubr.f32.mxu0 %v1153_v0 }
  0x5a   :  { %715 = vmatprep.mubr.f32.mxu1 %v1153_v0 }
  0x5c   :  { %938 = vmatmul.mubr.msk.f32.gmra.mrb[6].mxu0 %vm110_vm0, %v494_v42 }
  0x5d   :  { %942 = vmatmul.mubr.msk.f32.gmra.mrb[6].mxu1 %vm110_vm0, %v494_v42 }
 0x123   :  { %v610_v43 = vpop.f32.mrb[0].mxu0 }
 0x124   :  { %v699_v44 = vpop.f32.mrb[0].mxu1  ;;  %v612_v45 = vpop.f32.mrb[1].mxu0  ;;  %v808_v47 = vmul.f32 %v610_v43, %v610_v43 }
 0x125   :  { %v701_v46 = vpop.f32.mrb[1].mxu1  ;;  %v810_v52 = vmul.f32 %v699_v44, %v699_v44  ;;  %v809_v53 = vmul.f32 %v612_v45, %v612_v45 }
 0x126   :  { %v811_v62 = vmul.f32 %v701_v46, %v701_v46 }
 0x127   :  { %v616_v48 = vpop.f32.mrb[2].mxu0 }
 0x128   :  { %v738_v54 = vadd.f32 %v616_v48, %v610_v43  ;;  %v812_v55 = vmul.f32 %v616_v48, %v616_v48  ;;  %v705_v56 = vpop.f32.mrb[2].mxu1  ;;  %v618_v57 = vpop.f32.mrb[3].mxu0 }
 0x129   :  { %v756_v0 = vadd.f32 %v705_v56, %v699_v44  ;;  %v814_v58 = vmul.f32 %v705_v56, %v705_v56  ;;  %v747_v59 = vadd.f32 %v618_v57, %v612_v45  ;;  %v813_v60 = vmul.f32 %v618_v57, %v618_v57  ;;  %v707_v61 = vpop.f32.mrb[3].mxu1 }
 0x12a   :  { %v824_v63 = vadd.f32 %v812_v55, %v808_v47  ;;  %v765_v1 = vadd.f32 %v707_v61, %v701_v46  ;;  %v815_v2 = vmul.f32 %v707_v61, %v707_v61 }
 0x12b   :  { %v842_v3 = vadd.f32 %v814_v58, %v810_v52  ;;  %v833_v4 = vadd.f32 %v813_v60, %v809_v53  ;;  %v622_v5 = vpop.f32.mrb[4].mxu0 }
 0x12c   :  { %v851_v7 = vadd.f32 %v815_v2, %v811_v62  ;;  %v739_v8 = vadd.f32 %v738_v54, %v622_v5  ;;  %v816_v9 = vmul.f32 %v622_v5, %v622_v5  ;;  %v711_v10 = vpop.f32.mrb[4].mxu1  ;;  %v624_v11 = vpop.f32.mrb[5].mxu0 }
 0x12d   :  { %v757_v13 = vadd.f32 %v756_v0, %v711_v10  ;;  %v818_v14 = vmul.f32 %v711_v10, %v711_v10  ;;  %v748_v15 = vadd.f32 %v747_v59, %v624_v11  ;;  %v817_v16 = vmul.f32 %v624_v11, %v624_v11  ;;  %v713_v17 = vpop.f32.mrb[5].mxu1 }
 0x12e   :  { %v825_v18 = vadd.f32 %v824_v63, %v816_v9  ;;  %v766_v19 = vadd.f32 %v765_v1, %v713_v17  ;;  %v819_v20 = vmul.f32 %v713_v17, %v713_v17 }
 0x12f   :  { %v843_v21 = vadd.f32 %v842_v3, %v818_v14  ;;  %v834_v22 = vadd.f32 %v833_v4, %v817_v16  ;;  %v628_v23 = vpop.f32.mrb[6].mxu0 }
 0x130   :  { %v852_v24 = vadd.f32 %v851_v7, %v819_v20  ;;  %v740_v25 = vadd.f32 %v739_v8, %v628_v23  ;;  %v820_v26 = vmul.f32 %v628_v23, %v628_v23  ;;  %v717_v27 = vpop.f32.mrb[6].mxu1  ;;  %v630_v28 = vpop.f32.mrb[7].mxu0 }
 0x131   :  { %v758_v30 = vadd.f32 %v757_v13, %v717_v27  ;;  %v822_v31 = vmul.f32 %v717_v27, %v717_v27  ;;  %v749_v32 = vadd.f32 %v748_v15, %v630_v28  ;;  %v821_v33 = vmul.f32 %v630_v28, %v630_v28  ;;  %v719_v34 = vpop.f32.mrb[7].mxu1 }
 0x132   :  { %v741_v35 = vrot.slane %v740_v25, 4  ;;  %v826_v36 = vadd.f32 %v825_v18, %v820_v26  ;;  %v767_v37 = vadd.f32 %v766_v19, %v719_v34  ;;  %v823_v38 = vmul.f32 %v719_v34, %v719_v34 }
 0x133   :  { %v759_v39 = vrot.slane %v758_v30, 4  ;;  %v844_v40 = vadd.f32 %v843_v21, %v822_v31  ;;  %v750_v41 = vrot.slane %v749_v32, 4  ;;  %v835_v42 = vadd.f32 %v834_v22, %v821_v33 }
 0x134   :  { %v742_v43 = vadd.f32 %v741_v35, %v740_v25  ;;  %v827_v44 = vrot.slane %v826_v36, 4  ;;  %v768_v45 = vrot.slane %v767_v37, 4  ;;  %v853_v46 = vadd.f32 %v852_v24, %v823_v38 }
 0x135   :  { %v760_v47 = vadd.f32 %v759_v39, %v758_v30  ;;  %v845_v48 = vrot.slane %v844_v40, 4  ;;  %v751_v49 = vadd.f32 %v750_v41, %v749_v32  ;;  %v836_v50 = vrot.slane %v835_v42, 4 }
 0x136   :  { %v743_v52 = vrot.slane %v742_v43, 2  ;;  %v828_v53 = vadd.f32 %v827_v44, %v826_v36  ;;  %v769_v54 = vadd.f32 %v768_v45, %v767_v37  ;;  %v854_v55 = vrot.slane %v853_v46, 4 }
 0x137   :  { %v761_v56 = vrot.slane %v760_v47, 2  ;;  %v846_v57 = vadd.f32 %v845_v48, %v844_v40  ;;  %v752_v0 = vrot.slane %v751_v49, 2  ;;  %v837_v58 = vadd.f32 %v836_v50, %v835_v42 }
 0x138   :  { %v744_v59 = vadd.f32 %v743_v52, %v742_v43  ;;  %v829_v60 = vrot.slane %v828_v53, 2  ;;  %v770_v61 = vrot.slane %v769_v54, 2  ;;  %v855_v62 = vadd.f32 %v854_v55, %v853_v46 }
 0x139   :  { %v762_v63 = vadd.f32 %v761_v56, %v760_v47  ;;  %v847_v1 = vrot.slane %v846_v57, 2  ;;  %v753_v2 = vadd.f32 %v752_v0, %v751_v49  ;;  %v838_v3 = vrot.slane %v837_v58, 2 }
 0x13a   :  { %v745_v4 = vrot.slane %v744_v59, 1  ;;  %v830_v5 = vadd.f32 %v829_v60, %v828_v53  ;;  %v771_v6 = vadd.f32 %v770_v61, %v769_v54  ;;  %v856_v7 = vrot.slane %v855_v62, 2 }
 0x13b   :  { %v763_v8 = vrot.slane %v762_v63, 1  ;;  %v848_v9 = vadd.f32 %v847_v1, %v846_v57  ;;  %v754_v10 = vrot.slane %v753_v2, 1  ;;  %v839_v11 = vadd.f32 %v838_v3, %v837_v58 }
 0x13c   :  { %v746_v12 = vadd.f32 %v745_v4, %v744_v59  ;;  %v831_v13 = vrot.slane %v830_v5, 1  ;;  %v772_v14 = vrot.slane %v771_v6, 1  ;;  %v857_v15 = vadd.f32 %v856_v7, %v855_v62 }
 0x13d   :  { %v764_v16 = vadd.f32 %v763_v8, %v762_v63  ;;  %v849_v17 = vrot.slane %v848_v9, 1  ;;  %v755_v18 = vadd.f32 %v754_v10, %v753_v2  ;;  %v840_v19 = vrot.slane %v839_v11, 1 }
 0x13e   :  { %v832_v20 = vadd.f32 %v831_v13, %v830_v5  ;;  %v773_v21 = vadd.f32 %v772_v14, %v771_v6  ;;  %v858_v22 = vrot.slane %v857_v15, 1 }
 0x13f   :  { %v850_v23 = vadd.f32 %v849_v17, %v848_v9  ;;  %v778_v24 = vcombine.low %v746_v12, %v755_v18  ;;  %v841_v25 = vadd.f32 %v840_v19, %v839_v11 }
 0x140   :  { %v779_v26 = vcombine.low %v764_v16, %v773_v21  ;;  %v859_v27 = vadd.f32 %v858_v22, %v857_v15 }
 0x141   :  { %v864_v28 = vcombine.low %v832_v20, %v841_v25  ;;  %v786_v30 = vrot.slane %v778_v24, %v1274_v29 }
 0x142   :  { %v865_v31 = vcombine.low %v850_v23, %v859_v27  ;;  %v793_v32 = vrot.slane %v779_v26, %v1274_v29 }
 0x143   :  { %v872_v33 = vrot.slane %v864_v28, %v1274_v29 }
 0x144   :  { %v794_v34 = vcombine.low %v786_v30, %v793_v32  ;;  %v879_v35 = vrot.slane %v865_v31, %v1274_v29 }
 0x146   :  { %v801_v37 = vrot.slane %v794_v34, %v1274_v29  ;;  %v880_v38 = vcombine.low %v872_v33, %v879_v35 }
 0x148   :  { %807 = vst.msk [vmem:[#allocation5] sm:$0xf] %vm1281_vm1, %v801_v37  ;;  %v887_v39 = vrot.slane %v880_v38, %v1274_v29 }
 0x149   :  { %1111 = shalt.err (!%p1108_p12)
}
 0x14a   :  { %s1112_s27 = scalar_lea.hbm %s1317_s2, 64 }
 0x14b   :  { %p1113_p13 = scmp.ne.s32.totalorder %s1317_s2, %s1112_s27  ;;  %p1116_p0 = scmp.lt.u32.totalorder %s1112_s27, %s1317_s2 }
 0x14d   :  { %p1118_p1 = pnand %p1116_p0, %p1113_p13 }
 0x14f   :  { %1121 = shalt.err (!%p1118_p1)
}
 0x150   :  { %899 = dma.vmem_to_hbm [thread:$0]  %s897_s22, 64, %s1317_s2, [#allocation4]   ;;  %889 = vst.msk [vmem:[#allocation6] sm:$0xf] %vm1281_vm1, %v887_v39 }
 0x151   :  { %s1122_s7 = scalar_lea.vmem %s907_s24, 64  ;;  %p1127_p3 = scmp.lt.s32.totalorder %s907_s24, %s907_s24 }
 0x152   :  { %p1123_p2 = scmp.ne.s32.totalorder %s907_s24, %s1122_s7  ;;  %p1128_p4 = scmp.lt.s32.totalorder %s1122_s7, %s1122_s7 }
 0x154   :  { %p1129_p5 = por %p1128_p4, %p1127_p3 }
 0x156   :  { %p1130_p6 = pnand %p1129_p5, %p1123_p2 }
 0x158   :  { %1133 = shalt.err (!%p1130_p6)
}
 0x159   :  { %s1134_s10 = scalar_lea.hbm %s1318_s3, 64 }
 0x15a   :  { %p1135_p7 = scmp.ne.s32.totalorder %s1318_s3, %s1134_s10  ;;  %p1138_p8 = scmp.lt.u32.totalorder %s1134_s10, %s1318_s3 }
 0x15c   :  { %p1140_p9 = pnand %p1138_p8, %p1135_p7 }
 0x15e   :  { %1143 = shalt.err (!%p1140_p9)
}
 0x15f   :  { %909 = dma.vmem_to_hbm [thread:$0]  %s907_s24, 64, %s1318_s3, [#allocation7]  }
 0x160   :  { %1146 = dma.done.wait [#allocation4], 64  }
 0x161   :  { %1147 = vsyncadd [#allocation4], 4294967232 }
 0x162   :  { %1148 = dma.done.wait [#allocation7], 64  }
 0x163   :  { %1149 = vsyncadd [#allocation7], 4294967232 }
 0x164   :  { %916 = vsyncpa [#allocation3], 1 }
 0x165   :  { %917 = vsyncpa [#allocation4], 1 }
 0x166   :  { %918 = vsyncpa [#allocation7], 1 }

</bundles_post_ra>
